<compile_context>
chip_gen: v6e
topology: v6e:2x2x1
jax: 0.10.0
libtpu: 0.0.40
codegen_flags: <defaults>
</compile_context>

<pallas_src>
import functools

import jax
import jax.numpy as jnp
from jax.experimental import pallas as pl
from jax.experimental.pallas import tpu as pltpu

_LANE = 128
_SUBLANE = 8


def _fused_mlp_kernel(*refs, num_layers, compute_dtype):
    """One row-tile of the whole MLP: x -> [Linear+ReLU]*(L-1) -> Linear.

    refs = (x_ref, w0, b0, w1, b1, ..., w_{L-1}, b_{L-1}, o_ref).
    Weights arrive in compute_dtype (bf16), biases in f32; accumulation is f32.
    """
    x_ref = refs[0]
    o_ref = refs[1 + 2 * num_layers]

    h = x_ref[...].astype(compute_dtype)
    y = None
    for l in range(num_layers):
        w_ref = refs[1 + 2 * l]
        b_ref = refs[2 + 2 * l]
        y = jnp.dot(h, w_ref[...], preferred_element_type=jnp.float32)
        y = y + b_ref[...]                      # (1, C_out) broadcasts over rows
        if l < num_layers - 1:
            y = jnp.maximum(y, 0.0)             # ReLU in f32
            h = y.astype(compute_dtype)
            # TODO(synk): training-mode dropout would mask `h` here.
    o_ref[...] = y.astype(o_ref.dtype)


def _round_up(x, m):
    return ((x + m - 1) // m) * m


def _pick_tile_n(n, c_in, widths, weight_bytes,
                 vmem_budget_bytes=32 * 1024 * 1024):
    """Largest power-of-2 row tile (<=1024, >=8) fitting a v7x-safe VMEM budget."""
    tile = min(1024, pl.next_power_of_2(max(n, _SUBLANE)))
    tile = max(tile, _SUBLANE)
    max_w = max(widths)
    while tile > _SUBLANE:
        x_bytes = tile * c_in * 2                # bf16 input tile
        o_bytes = tile * widths[-1] * 4          # f32 output tile
        act_bytes = tile * max_w * 4             # f32 intermediate activation
        est = 2 * (x_bytes + o_bytes) + 2 * act_bytes + weight_bytes
        if est <= vmem_budget_bytes:
            break
        tile //= 2
    return tile


def csmlp_forward(x, params, dropout_p=0.5, *, compute_dtype=jnp.bfloat16):
    """Inference forward pass of CSMLP as one fused Pallas kernel.

    x: [N, C_in] float32.  params: list of (w [C_in, C_out] f32, b [1, C_out] f32).
    Dropout is identity at inference (training=False).
    """
    del dropout_p  # identity at inference
    n, c_in = x.shape
    num_layers = len(params)
    c_out = params[-1][0].shape[1]

    # --- lane-dense final output: pad C_out up to a multiple of 128 ----------
    c_out_pad = _round_up(c_out, _LANE)
    kparams = []
    for idx, (w, b) in enumerate(params):
        if idx == num_layers - 1 and c_out_pad != c_out:
            w = jnp.pad(w, ((0, 0), (0, c_out_pad - c_out)))
            b = jnp.pad(b, ((0, 0), (0, c_out_pad - c_out)))
        # bf16 weights for the MXU + halved HBM/VMEM traffic; biases stay f32.
        kparams.append((w.astype(compute_dtype), b.astype(jnp.float32)))

    # --- row tiling -----------------------------------------------------------
    widths = [w.shape[1] for w, _ in kparams]
    weight_bytes = sum(w.size * w.dtype.itemsize + b.size * b.dtype.itemsize
                       for w, b in kparams)
    tile_n = _pick_tile_n(n, c_in, widths, weight_bytes)
    n_pad = _round_up(n, tile_n)

    x_c = x.astype(compute_dtype)
    if n_pad != n:
        x_c = jnp.pad(x_c, ((0, n_pad - n), (0, 0)))

    grid = (n_pad // tile_n,)

    in_specs = [pl.BlockSpec((tile_n, c_in), lambda i: (i, 0))]
    flat_inputs = [x_c]
    for w, b in kparams:
        # Weights/biases are tiny: full-array resident blocks, fetched once.
        in_specs.append(pl.BlockSpec(w.shape, lambda i: (0, 0)))
        in_specs.append(pl.BlockSpec(b.shape, lambda i: (0, 0)))
        flat_inputs.extend([w, b])

    out_specs = pl.BlockSpec((tile_n, c_out_pad), lambda i: (i, 0))
    out_shape = jax.ShapeDtypeStruct((n_pad, c_out_pad), jnp.float32)

    # Advisory cost estimate so XLA can schedule around the custom call.
    flops = 0
    prev = c_in
    for width in widths:
        flops += 2 * n_pad * prev * width
        prev = width
    bytes_accessed = (x_c.size * x_c.dtype.itemsize
                      + weight_bytes
                      + n_pad * c_out_pad * 4)

    kernel = functools.partial(_fused_mlp_kernel,
                               num_layers=num_layers,
                               compute_dtype=compute_dtype)

    out = pl.pallas_call(
        kernel,
        out_shape=out_shape,
        grid=grid,
        in_specs=in_specs,
        out_specs=out_specs,
        compiler_params=pltpu.CompilerParams(
            # "parallel" row axis: v7x shards tiles over its 2 TCs; neutral on v5e/v6e.
            dimension_semantics=("parallel",),
            # Above the 16/32 MiB scoped default, under v7x's 64 MiB physical VMEM.
            vmem_limit_bytes=48 * 1024 * 1024,
        ),
        cost_estimate=pl.CostEstimate(
            flops=flops, transcendentals=0, bytes_accessed=bytes_accessed),
    )(*flat_inputs)

    return out[:n, :c_out]


def init_csmlp_params(key, in_channels, hidden_channels, out_channels, num_layers):
    """torch.nn.Linear default init (uniform +-1/sqrt(fan_in)).

    Weights are stored as [C_in, C_out] (transposed vs. PyTorch's [out, in]).
    """
    dims = [in_channels] + [hidden_channels] * (num_layers - 1) + [out_channels]
    params = []
    for i in range(num_layers):
        key, kw, kb = jax.random.split(key, 3)
        fan_in, fan_out = dims[i], dims[i + 1]
        bound = 1.0 / (fan_in ** 0.5)
        w = jax.random.uniform(kw, (fan_in, fan_out), jnp.float32, -bound, bound)
        b = jax.random.uniform(kb, (1, fan_out), jnp.float32, -bound, bound)
        params.append((w, b))
    return params


if __name__ == "__main__":
    # Small shapes consistent with the module: N samples, feature MLP.
    N, in_channels, hidden_channels, out_channels = 16, 32, 64, 8
    num_layers = 3  # args.num_layers

    key = jax.random.PRNGKey(0)
    key, kx = jax.random.split(key)
    x = jax.random.normal(kx, (N, in_channels), jnp.float32)

    params = init_csmlp_params(key, in_channels, hidden_channels,
                               out_channels, num_layers)

    out = csmlp_forward(x, params)
    out = jax.block_until_ready(out)

    # Pure-JAX reference using the same bf16-operand / f32-accumulation recipe.
    cd = jnp.bfloat16
    ref = x.astype(cd)
    for w, b in params[:-1]:
        y = jnp.dot(ref, w.astype(cd), preferred_element_type=jnp.float32) + b
        ref = jnp.maximum(y, 0.0).astype(cd)
    w, b = params[-1]
    ref = jnp.dot(ref, w.astype(cd), preferred_element_type=jnp.float32) + b

    assert out.shape == (N, out_channels)
    max_err = float(jnp.max(jnp.abs(out - ref)))
    assert jnp.allclose(out, ref, atol=1e-2, rtol=1e-2), max_err

    print("KERNEL_OK")
</pallas_src>

<mosaic_0001>
module attributes {stable_mosaic.version = 11 : i64} {
  func.func @_fused_mlp_kernel(%arg0: i32, %arg1: memref<16x32xbf16, #tpu.memory_space<vmem>>, %arg2: memref<32x64xbf16, #tpu.memory_space<vmem>>, %arg3: memref<1x64xf32, #tpu.memory_space<vmem>>, %arg4: memref<64x64xbf16, #tpu.memory_space<vmem>>, %arg5: memref<1x64xf32, #tpu.memory_space<vmem>>, %arg6: memref<64x128xbf16, #tpu.memory_space<vmem>>, %arg7: memref<1x128xf32, #tpu.memory_space<vmem>>, %arg8: memref<16x128xf32, #tpu.memory_space<vmem>>) attributes {dimension_semantics = [#tpu.dimension_semantics<parallel>], iteration_bounds = array<i64: 1>, scalar_prefetch = 0 : i64, scratch_operands = 0 : i64, tpu.core_type = #tpu.core_type<tc>, window_params = [{transform_indices = @transform_0, window_bounds = array<i64: 16, 32>}, {pipeline_mode = #tpu.pipeline_mode<synchronous>, transform_indices = @transform_1, window_bounds = array<i64: 32, 64>}, {pipeline_mode = #tpu.pipeline_mode<synchronous>, transform_indices = @transform_2, window_bounds = array<i64: 1, 64>}, {pipeline_mode = #tpu.pipeline_mode<synchronous>, transform_indices = @transform_3, window_bounds = array<i64: 64, 64>}, {pipeline_mode = #tpu.pipeline_mode<synchronous>, transform_indices = @transform_4, window_bounds = array<i64: 1, 64>}, {pipeline_mode = #tpu.pipeline_mode<synchronous>, transform_indices = @transform_5, window_bounds = array<i64: 64, 128>}, {pipeline_mode = #tpu.pipeline_mode<synchronous>, transform_indices = @transform_6, window_bounds = array<i64: 1, 128>}, {transform_indices = @transform_7, window_bounds = array<i64: 16, 128>}]} {
    %c0 = arith.constant 0 : index
    %c0_0 = arith.constant 0 : index
    %0 = vector.load %arg1[%c0, %c0_0] : memref<16x32xbf16, #tpu.memory_space<vmem>>, vector<16x32xbf16>
    %c0_1 = arith.constant 0 : index
    %c0_2 = arith.constant 0 : index
    %1 = vector.load %arg2[%c0_1, %c0_2] : memref<32x64xbf16, #tpu.memory_space<vmem>>, vector<32x64xbf16>
    %cst = arith.constant dense<0.000000e+00> : vector<16x64xf32>
    %2 = tpu.matmul %0, %1, %cst {dimension_numbers = #tpu.dot_dimension_numbers<[1], [0], [0], [1], [0, 0, 1, 1], [], []>} : vector<16x32xbf16>, vector<32x64xbf16>, vector<16x64xf32> -> vector<16x64xf32>
    %c0_3 = arith.constant 0 : index
    %c0_4 = arith.constant 0 : index
    %3 = vector.load %arg3[%c0_3, %c0_4] : memref<1x64xf32, #tpu.memory_space<vmem>>, vector<1x64xf32>
    %4 = vector.broadcast %3 : vector<1x64xf32> to vector<16x64xf32>
    %5 = arith.addf %2, %4 : vector<16x64xf32>
    %cst_5 = arith.constant 0.000000e+00 : f32
    %6 = vector.broadcast %cst_5 : f32 to vector<16x64xf32>
    %7 = arith.maximumf %5, %6 : vector<16x64xf32>
    %8 = arith.truncf %7 : vector<16x64xf32> to vector<16x64xbf16>
    %c0_6 = arith.constant 0 : index
    %c0_7 = arith.constant 0 : index
    %9 = vector.load %arg4[%c0_6, %c0_7] : memref<64x64xbf16, #tpu.memory_space<vmem>>, vector<64x64xbf16>
    %cst_8 = arith.constant dense<0.000000e+00> : vector<16x64xf32>
    %10 = tpu.matmul %8, %9, %cst_8 {dimension_numbers = #tpu.dot_dimension_numbers<[1], [0], [0], [1], [0, 0, 1, 1], [], []>} : vector<16x64xbf16>, vector<64x64xbf16>, vector<16x64xf32> -> vector<16x64xf32>
    %c0_9 = arith.constant 0 : index
    %c0_10 = arith.constant 0 : index
    %11 = vector.load %arg5[%c0_9, %c0_10] : memref<1x64xf32, #tpu.memory_space<vmem>>, vector<1x64xf32>
    %12 = vector.broadcast %11 : vector<1x64xf32> to vector<16x64xf32>
    %13 = arith.addf %10, %12 : vector<16x64xf32>
    %cst_11 = arith.constant 0.000000e+00 : f32
    %14 = vector.broadcast %cst_11 : f32 to vector<16x64xf32>
    %15 = arith.maximumf %13, %14 : vector<16x64xf32>
    %16 = arith.truncf %15 : vector<16x64xf32> to vector<16x64xbf16>
    %c0_12 = arith.constant 0 : index
    %c0_13 = arith.constant 0 : index
    %17 = vector.load %arg6[%c0_12, %c0_13] : memref<64x128xbf16, #tpu.memory_space<vmem>>, vector<64x128xbf16>
    %cst_14 = arith.constant dense<0.000000e+00> : vector<16x128xf32>
    %18 = tpu.matmul %16, %17, %cst_14 {dimension_numbers = #tpu.dot_dimension_numbers<[1], [0], [0], [1], [0, 0, 1, 1], [], []>} : vector<16x64xbf16>, vector<64x128xbf16>, vector<16x128xf32> -> vector<16x128xf32>
    %c0_15 = arith.constant 0 : index
    %c0_16 = arith.constant 0 : index
    %19 = vector.load %arg7[%c0_15, %c0_16] : memref<1x128xf32, #tpu.memory_space<vmem>>, vector<1x128xf32>
    %20 = vector.broadcast %19 : vector<1x128xf32> to vector<16x128xf32>
    %21 = arith.addf %18, %20 : vector<16x128xf32>
    %c0_17 = arith.constant 0 : index
    %c0_18 = arith.constant 0 : index
    %22 = vector.load %arg8[%c0_17, %c0_18] : memref<16x128xf32, #tpu.memory_space<vmem>>, vector<16x128xf32>
    tpu.vector_store %arg8[%c0_17, %c0_18], %21 {strides = array<i32>} : memref<16x128xf32, #tpu.memory_space<vmem>>, vector<16x128xf32>,
    return
  }
  func.func @transform_0(%arg0: i32) -> (i32, i32) {
    %c0_i32 = arith.constant 0 : i32
    %c0_i32_0 = arith.constant 0 : i32
    return %arg0, %c0_i32 : i32, i32
  }
  func.func @transform_1(%arg0: i32) -> (i32, i32) {
    %c0_i32 = arith.constant 0 : i32
    %c0_i32_0 = arith.constant 0 : i32
    %c0_i32_1 = arith.constant 0 : i32
    return %c0_i32, %c0_i32_0 : i32, i32
  }
  func.func @transform_2(%arg0: i32) -> (i32, i32) {
    %c0_i32 = arith.constant 0 : i32
    %c0_i32_0 = arith.constant 0 : i32
    %c0_i32_1 = arith.constant 0 : i32
    return %c0_i32, %c0_i32_0 : i32, i32
  }
  func.func @transform_3(%arg0: i32) -> (i32, i32) {
    %c0_i32 = arith.constant 0 : i32
    %c0_i32_0 = arith.constant 0 : i32
    %c0_i32_1 = arith.constant 0 : i32
    return %c0_i32, %c0_i32_0 : i32, i32
  }
  func.func @transform_4(%arg0: i32) -> (i32, i32) {
    %c0_i32 = arith.constant 0 : i32
    %c0_i32_0 = arith.constant 0 : i32
    %c0_i32_1 = arith.constant 0 : i32
    return %c0_i32, %c0_i32_0 : i32, i32
  }
  func.func @transform_5(%arg0: i32) -> (i32, i32) {
    %c0_i32 = arith.constant 0 : i32
    %c0_i32_0 = arith.constant 0 : i32
    %c0_i32_1 = arith.constant 0 : i32
    return %c0_i32, %c0_i32_0 : i32, i32
  }
  func.func @transform_6(%arg0: i32) -> (i32, i32) {
    %c0_i32 = arith.constant 0 : i32
    %c0_i32_0 = arith.constant 0 : i32
    %c0_i32_1 = arith.constant 0 : i32
    return %c0_i32, %c0_i32_0 : i32, i32
  }
  func.func @transform_7(%arg0: i32) -> (i32, i32) {
    %c0_i32 = arith.constant 0 : i32
    %c0_i32_0 = arith.constant 0 : i32
    return %arg0, %c0_i32 : i32, i32
  }
}

</mosaic_0001>

<bundles_post_ra>
// kernel: tpu_custom_call.1
= control target key start
LH: loop header
LB: loop body
LE: loop exit
PB: predicated region body
PF: predicated region fallthrough
CT: control target
= control target key end

     0   :  { %12 = vsyncpa [#allocation3], 0  ;;  %s636_s0 = inlined_call_operand.hbm [shape: bf16[16,32], index: 0, kind: input, shape index: {}]   ;;  %s637_s1 = inlined_call_operand.hbm [shape: bf16[32,64], index: 1, kind: input, shape index: {}]   ;;  %s638_s2 = inlined_call_operand.vmem [shape: f32[1,64], index: 2, kind: input, shape index: {}]   ;;  %s639_s3 = inlined_call_operand.hbm [shape: bf16[64,64], index: 3, kind: input, shape index: {}]   ;;  %s640_s4 = inlined_call_operand.vmem [shape: f32[1,64], index: 4, kind: input, shape index: {}]   ;;  %s641_s5 = inlined_call_operand.hbm [shape: bf16[64,128], index: 5, kind: input, shape index: {}]   ;;  %s642_s6 = inlined_call_operand.vmem [shape: f32[1,128], index: 6, kind: input, shape index: {}]   ;;  %s643_s7 = inlined_call_operand.hbm [shape: f32[16,128], index: 7, kind: output, shape index: {}]  }
   0x1   :  { %13 = vsyncpa [#allocation6], 0 }
   0x2   :  { %14 = vsyncpa [#allocation9], 0 }
   0x3   :  { %15 = vsyncpa [#allocation4], 0  ;;  %s544_s24 = smov [#allocation5]   ;;  %s545_s26 = smov [#allocation2]  }
   0x4   :  { %s33_s25 = sshll.u32 %s544_s24, 4  ;;  %s21_s27 = sshll.u32 %s545_s26, 4  ;;  %s34_s25 = int_to_ptr.vmem [resolvable:$true] %s33_s25  ;;  %s22_s27 = int_to_ptr.vmem [resolvable:$true] %s21_s27 }
   0x5   :  { %s444_s28 = scalar_lea.vmem %s34_s25, 256  ;;  %p449_p1 = scmp.lt.s32.totalorder %s34_s25, %s34_s25 }
   0x6   :  { %p445_p0 = scmp.ne.s32.totalorder %s34_s25, %s444_s28  ;;  %p450_p2 = scmp.lt.s32.totalorder %s444_s28, %s444_s28 }
   0x8   :  { %p451_p3 = por %p450_p2, %p449_p1 }
   0xa   :  { %p452_p4 = pnand %p451_p3, %p445_p0 }
   0xc   :  { %455 = shalt.err (!%p452_p4)
}
   0xd   :  { %s546_s29 = smov 64   ;;  %s547_s30 = smov 4  }
   0xe   :  { %39 = dma.hbm_to_vmem [thread:$0]  %s637_s1, 256, %s34_s25, [#allocation6], %s546_s29, %s546_s29, %s547_s30  }
   0xf   :  { %s464_s10 = scalar_lea.vmem %s22_s27, 128  ;;  %p469_p6 = scmp.lt.s32.totalorder %s22_s27, %s22_s27 }
  0x10   :  { %p465_p5 = scmp.ne.s32.totalorder %s22_s27, %s464_s10  ;;  %p470_p7 = scmp.lt.s32.totalorder %s464_s10, %s464_s10 }
  0x12   :  { %p471_p8 = por %p470_p7, %p469_p6 }
  0x14   :  { %p472_p9 = pnand %p471_p8, %p465_p5 }
  0x16   :  { %475 = shalt.err (!%p472_p9)
}
  0x17   :  { %27 = dma.hbm_to_vmem [thread:$0]  %s636_s0, 128, %s22_s27, [#allocation3], %s546_s29, %s546_s29, %s547_s30  }
  0x18   :  { %s548_s13 = smov [#allocation7]   ;;  %s549_s15 = smov [#allocation8]  }
  0x19   :  { %s47_s14 = sshll.u32 %s548_s13, 4  ;;  %s61_s16 = sshll.u32 %s549_s15, 4  ;;  %s48_s14 = int_to_ptr.vmem [resolvable:$true] %s47_s14  ;;  %s62_s16 = int_to_ptr.vmem [resolvable:$true] %s61_s16 }
  0x1a   :  { %s484_s1 = scalar_lea.vmem %s48_s14, 512  ;;  %p489_p11 = scmp.lt.s32.totalorder %s48_s14, %s48_s14 }
  0x1b   :  { %p485_p10 = scmp.ne.s32.totalorder %s48_s14, %s484_s1  ;;  %p490_p12 = scmp.lt.s32.totalorder %s484_s1, %s484_s1 }
  0x1d   :  { %p491_p13 = por %p490_p12, %p489_p11 }
  0x1f   :  { %p492_p0 = pnand %p491_p13, %p485_p10 }
  0x21   :  { %495 = shalt.err (!%p492_p0)
}
  0x22   :  { %53 = dma.hbm_to_vmem [thread:$0]  %s639_s3, 512, %s48_s14, [#allocation6], %s546_s29, %s546_s29, %s547_s30  }
  0x23   :  { %s504_s0 = scalar_lea.vmem %s62_s16, 512  ;;  %p509_p2 = scmp.lt.s32.totalorder %s62_s16, %s62_s16 }
  0x24   :  { %p505_p1 = scmp.ne.s32.totalorder %s62_s16, %s504_s0  ;;  %p510_p3 = scmp.lt.s32.totalorder %s504_s0, %s504_s0 }
  0x26   :  { %p511_p4 = por %p510_p3, %p509_p2 }
  0x28   :  { %p512_p5 = pnand %p511_p4, %p505_p1 }
  0x2a   :  { %515 = shalt.err (!%p512_p5)
}
  0x2b   :  { %67 = dma.hbm_to_vmem [thread:$0]  %s641_s5, 512, %s62_s16, [#allocation9], %s546_s29, %s546_s29, %s547_s30  }
  0x2c   :  { %536 = dma.done.wait [#allocation3], 128  }
  0x2d   :  { %537 = vsyncadd [#allocation3], 4294967168 }
  0x2e   :  { %538 = dma.done.wait [#allocation6], 768  }
  0x2f   :  { %539 = vsyncadd [#allocation6], 4294966528 }
  0x30   :  { %540 = dma.done.wait [#allocation9], 512  }
  0x31   :  { %541 = vsyncadd [#allocation9], 4294966784  ;;  %v550_v0 = vmov 0.0   ;;  %vm551_vm0 = vmmov 0   ;;  %v425_v1 = vld [vmem:[#allocation5 + $0x8] sm:$0xff]   ;;  %v426_v2 = vld [vmem:[#allocation5] sm:$0xff]  }
  0x32   :  { %382 = vmatprep.subr.bf16.mxu0 %v550_v0  ;;  %386 = vmatprep.mubr.msk.bf16.mxu0 %vm551_vm0, %v550_v0  ;;  %v428_v3 = vld [vmem:[#allocation7 + $0x18] sm:$0xff]   ;;  %v427_v4 = vld [vmem:[#allocation2] sm:$0xff]   ;;  %vm113_vm1 = vcmask 261120   ;;  %v429_v5 = vld [vmem:[#allocation7 + $0x10] sm:$0xff]   ;;  %vm200_vm2 = vcmask 523264   ;;  %s552_s24 = smov [#allocation10]  }
  0x33   :  { %390 = vmatprep.subr.bf16.mxu1 %v550_v0  ;;  %398 = vmatprep.mubr.msk.bf16.mxu1 %vm551_vm0, %v550_v0  ;;  %v430_v6 = vld [vmem:[#allocation7 + $0x8] sm:$0xff]   ;;  %v431_v7 = vld [vmem:[#allocation7] sm:$0xff]   ;;  %v432_v8 = vld [vmem:[#allocation8 + $0x18] sm:$0xff]   ;;  %s338_s25 = sshll.u32 %s552_s24, 4  ;;  %s339_s25 = int_to_ptr.vmem [resolvable:$true] %s338_s25 }
  0x34   :  { %383 = vmatpush3.bf16.msra.mxu0 %v425_v1  ;;  %391 = vmatpush3.bf16.msra.mxu1 %v428_v3  ;;  %v352_v9 = vld [vmem:[%s638_s2] ss:$0 sm:$0xff]  ;;  %v433_v19 = vld [vmem:[#allocation8 + $0x10] sm:$0xff]   ;;  %v435_v21 = vld [vmem:[#allocation8] sm:$0xff]   ;;  %p521_p7 = scmp.lt.s32.totalorder %s339_s25, %s339_s25 }
  0x35   :  { %384 = vmatprep.subr.bf16.mxu0 %v550_v0  ;;  %392 = vmatprep.subr.bf16.mxu1 %v550_v0  ;;  %v434_v20 = vld [vmem:[#allocation8 + $0x8] sm:$0xff]  }
  0x36   :  { %v357_v22 = vld [vmem:[%s640_s4] ss:$0 sm:$0xff]  ;;  %s516_s4 = scalar_lea.vmem %s339_s25, 256 }
  0x37   :  { %v363_v32 = vld [vmem:[%s642_s6] ss:$0 sm:$0xff]  ;;  %p517_p6 = scmp.ne.s32.totalorder %s339_s25, %s516_s4  ;;  %p522_p8 = scmp.lt.s32.totalorder %s516_s4, %s516_s4 }
  0x38   :  { %385 = vmatpush3.bf16.msra.mxu0 %v426_v2  ;;  %393 = vmatpush3.bf16.msra.mxu1 %v429_v5 }
  0x39   :  { %402 = vmatprep.subr.bf16.mxu0 %v550_v0  ;;  %394 = vmatprep.subr.bf16.mxu1 %v550_v0  ;;  %p523_p9 = por %p522_p8, %p521_p7 }
  0x3b   :  { %387 = vmatmul.mubr.msk.bf16.vlgmr.msra.gmra.mxu0 %vm113_vm1, %v427_v4  ;;  %p524_p10 = pnand %p523_p9, %p517_p6 }
  0x3c   :  { %410 = vmatprep.mubr.msk.bf16.mxu0 %vm551_vm0, %v550_v0  ;;  %395 = vmatpush3.bf16.msra.mxu1 %v430_v6 }
  0x3d   :  { %396 = vmatprep.subr.bf16.mxu1 %v550_v0  ;;  %403 = vmatpush3.bf16.msra.mxu0 %v432_v8 }
  0x3e   :  { %404 = vmatprep.subr.bf16.mxu0 %v550_v0 }
  0x40   :  { %397 = vmatpush3.bf16.msra.mxu1 %v431_v7 }
  0x41   :  { %405 = vmatpush3.bf16.msra.mxu0 %v433_v19 }
  0x42   :  { %406 = vmatprep.subr.bf16.mxu0 %v550_v0 }
  0x45   :  { %407 = vmatpush3.bf16.msra.mxu0 %v434_v20 }
  0x46   :  { %408 = vmatprep.subr.bf16.mxu0 %v550_v0 }
  0x49   :  { %409 = vmatpush3.bf16.msra.mxu0 %v435_v21 }
  0xfb   :  { %v151_v10 = vpop.f32.mrf.mxu0 }
  0xfc   :  { %v152_v12 = vadd.f32 %v352_v9, %v151_v10 }
  0xfd   :  { %v388_v11 = vpop.f32.mrf.mxu0 }
  0xfe   :  { %v158_v16 = vmax.f32 %v152_v12, 0.0 }
  0xff   :  { %v154_v13 = vpop.f32.mrf.mxu0 }
 0x100   :  { %v155_v14 = vadd.f32 %v352_v9, %v154_v13 }
 0x101   :  { %v389_v15 = vpop.f32.mrf.mxu0 }
 0x102   :  { %v159_v17 = vmax.f32 %v155_v14, 0.0 }
 0x104   :  { %v160_v18 = vpack.c.bf16 %v159_v17, %v158_v16 }
 0x106   :  { %399 = vmatmul.mubr.msk.bf16.vlgmr.msra.gmra.mxu1 %vm200_vm2, %v160_v18 }
 0x1c6   :  { %v238_v23 = vpop.f32.mrf.mxu1 }
 0x1c7   :  { %v239_v25 = vadd.f32 %v357_v22, %v238_v23 }
 0x1c8   :  { %v400_v24 = vpop.f32.mrf.mxu1 }
 0x1c9   :  { %v245_v29 = vmax.f32 %v239_v25, 0.0 }
 0x1ca   :  { %v241_v26 = vpop.f32.mrf.mxu1 }
 0x1cb   :  { %v242_v27 = vadd.f32 %v357_v22, %v241_v26 }
 0x1cc   :  { %v401_v28 = vpop.f32.mrf.mxu1 }
 0x1cd   :  { %v246_v30 = vmax.f32 %v242_v27, 0.0 }
 0x1cf   :  { %v247_v31 = vpack.c.bf16 %v246_v30, %v245_v29 }
 0x1d1   :  { %411 = vmatmul.mubr.msk.bf16.vlgmr.msra.gmra.mxu0 %vm200_vm2, %v247_v31 }
 0x291   :  { %v324_v33 = vpop.f32.mrf.mxu0 }
 0x292   :  { %v325_v34 = vadd.f32 %v363_v32, %v324_v33 }
 0x293   :  { %v412_v35 = vpop.f32.mrf.mxu0 }
 0x294   :  { %331 = vst [vmem:[#allocation10] sm:$0xff] %v325_v34 }
 0x295   :  { %v327_v36 = vpop.f32.mrf.mxu0 }
 0x296   :  { %v328_v37 = vadd.f32 %v363_v32, %v327_v36 }
 0x297   :  { %v413_v38 = vpop.f32.mrf.mxu0 }
 0x298   :  { %332 = vst [vmem:[#allocation10 + $0x8] sm:$0xff] %v328_v37 }
 0x299   :  { %527 = shalt.err (!%p524_p10)
}
 0x29a   :  { %s553_s26 = smov 128   ;;  %s554_s6 = smov 8  }
 0x29b   :  { %344 = dma.vmem_to_hbm [thread:$0]  %s339_s25, 256, %s643_s7, [#allocation4], %s553_s26, %s553_s26, %s554_s6  }
 0x29c   :  { %542 = dma.done.wait [#allocation4], 256  }
 0x29d   :  { %543 = vsyncadd [#allocation4], 4294967040 }
 0x29e   :  { %348 = vsyncpa [#allocation3], 1 }
 0x29f   :  { %349 = vsyncpa [#allocation6], 1 }
 0x2a0   :  { %350 = vsyncpa [#allocation9], 1 }
 0x2a1   :  { %351 = vsyncpa [#allocation4], 1 }

</bundles_post_ra>
